<compile_context>
chip_gen: v6e
topology: v6e:2x2x1
jax: 0.10.0
libtpu: 0.0.40
codegen_flags: <defaults>
</compile_context>

<pallas_src>
import functools

import jax
import jax.numpy as jnp
from jax.experimental import pallas as pl
from jax.experimental.pallas import tpu as pltpu

LANE = 128
NEG_BIG = -1e30
MAX_TILE_B = 512


def _round_up(x, m):
    return (x + m - 1) // m * m


# ------------------------------------------------------------------ kernel ---
def head_kernel(ids_ref, emb_ref, w_ref, b_ref, o_ref, *, num_classes, vocab_pad):
    # ids_ref: [TB, S] int32 (only column 0 / CLS is used)
    # emb_ref: [Vpad, H] f32   resident (tok_emb + pos_emb[0], vocab rows padded)
    # w_ref:   [3, 128, 128] bf16 resident stacked MLP weights (LN affine folded into w[0])
    # b_ref:   [3, 128] f32 resident stacked biases
    # o_ref:   [TB, 128] f32 lane-dense softmax output (padded class lanes)

    ids = ids_ref[...][:, 0:1]                                   # [TB, 1] CLS ids
    tb = ids.shape[0]

    # ---- fused CLS embedding gather: exact one-hot matmul on the MXU ----
    vcol = jax.lax.broadcasted_iota(jnp.int32, (tb, vocab_pad), 1)
    onehot = (vcol == ids).astype(jnp.float32)
    x = jnp.dot(onehot, emb_ref[...], preferred_element_type=jnp.float32)  # [TB, H]

    # ---- layernorm (affine folded into first linear on host), f32 math ----
    mu = jnp.mean(x, axis=1, keepdims=True)
    xc = x - mu
    var = jnp.mean(xc * xc, axis=1, keepdims=True)
    xn = xc * jax.lax.rsqrt(var + 1e-12)

    # ---- MLP head: bf16 MXU operands, f32 accumulation, f32 elementwise ----
    w = w_ref[...]                                               # [3,128,128] bf16
    b = b_ref[...]                                               # [3,128] f32

    h1 = jnp.dot(xn.astype(jnp.bfloat16), w[0],
                 preferred_element_type=jnp.float32) + b[0]
    h1 = jnp.maximum(h1, 0.0)                                    # ReLU

    h2 = jnp.dot(h1.astype(jnp.bfloat16), w[1],
                 preferred_element_type=jnp.float32) + b[1]
    h2 = jnp.maximum(h2, 0.0)                                    # ReLU

    logits = jnp.dot(h2.astype(jnp.bfloat16), w[2],
                     preferred_element_type=jnp.float32) + b[2]

    # mask lane-padded class columns so they carry no probability mass
    ccol = jax.lax.broadcasted_iota(jnp.int32, logits.shape, 1)
    logits = jnp.where(ccol < num_classes, logits, NEG_BIG)

    # numerically stable softmax; exact divide (rows sum to 1 to f32 precision)
    m = jnp.max(logits, axis=1, keepdims=True)
    e = jnp.exp(logits - m)
    o_ref[...] = e / jnp.sum(e, axis=1, keepdims=True)


# ----------------------------------------------- one-time host-side prep -----
def prepare_params(tok_emb, pos_emb, ln_g, ln_b, w1, b1, w2, b2, w3, b3):
    """Fold pos_emb[CLS] into the embedding table, fold the LN affine into the
    first linear, zero-pad every linear to lane-aligned 128x128 tiles (bf16)
    and stack weights/biases so the kernel takes only 3 resident inputs."""
    V, H = tok_emb.shape
    assert H == LANE, "this small example assumes model_hidden_size == 128"
    vocab_pad = _round_up(max(V, 8), 8)

    emb = tok_emb + pos_emb[0][None, :]
    emb_p = jnp.zeros((vocab_pad, H), jnp.float32).at[:V].set(emb)

    g = jnp.reshape(ln_g, (-1,))
    beta = jnp.reshape(ln_b, (-1,))
    w1f = g[:, None] * w1                     # fold LN scale
    b1f = beta @ w1 + b1                      # fold LN shift

    def pad_w(w):
        wi, wo = w.shape
        assert wi <= LANE and wo <= LANE
        return jnp.zeros((LANE, LANE), jnp.float32).at[:wi, :wo].set(w)

    def pad_b(b):
        return jnp.zeros((LANE,), jnp.float32).at[:b.shape[0]].set(b)

    w_stack = jnp.stack([pad_w(w1f), pad_w(w2), pad_w(w3)]).astype(jnp.bfloat16)
    b_stack = jnp.stack([pad_b(b1f), pad_b(b2), pad_b(b3)]).astype(jnp.float32)
    return emb_p, w_stack, b_stack


# -------------------------------------------------------------- full forward --
@functools.partial(jax.jit, static_argnames=("num_classes",))
def mymodel_forward(input_ids, attention_mask, emb_p, w_stack, b_stack,
                    *, num_classes):
    del attention_mask  # unused by the embedding-layer backbone stand-in
    B, S = input_ids.shape
    vocab_pad, H = emb_p.shape
    assert H == LANE

    # one big tile for small B (single-TC chips: minimal per-step overhead);
    # cap at 512 so large batches give >=2 "parallel" steps (v7x megacore)
    tile_b = B if B <= MAX_TILE_B else MAX_TILE_B
    grid = (pl.cdiv(B, tile_b),)

    out = pl.pallas_call(
        functools.partial(head_kernel, num_classes=num_classes,
                          vocab_pad=vocab_pad),
        out_shape=jax.ShapeDtypeStruct((B, LANE), jnp.float32),
        grid=grid,
        in_specs=[
            pl.BlockSpec((tile_b, S), lambda i: (i, 0)),          # ids, per-tile
            pl.BlockSpec((vocab_pad, H), lambda i: (0, 0)),       # resident emb
            pl.BlockSpec((3, LANE, LANE), lambda i: (0, 0, 0)),   # resident W
            pl.BlockSpec((3, LANE), lambda i: (0, 0)),            # resident b
        ],
        out_specs=pl.BlockSpec((tile_b, LANE), lambda i: (i, 0)),
        compiler_params=pltpu.CompilerParams(
            dimension_semantics=("parallel",)),
    )(input_ids.astype(jnp.int32), emb_p, w_stack, b_stack)

    return out[:, :num_classes]


# ---------------------------------------------------------------- reference ---
def reference_forward(input_ids, tok_emb, pos_emb, ln_g, ln_b,
                      w1, b1, w2, b2, w3, b3):
    x = tok_emb[input_ids[:, 0]] + pos_emb[0][None, :]
    mu = jnp.mean(x, -1, keepdims=True)
    var = jnp.mean((x - mu) ** 2, -1, keepdims=True)
    x = (x - mu) * jax.lax.rsqrt(var + 1e-12) * ln_g + ln_b
    h1 = jnp.maximum(x @ w1 + b1, 0.0)
    h2 = jnp.maximum(h1 @ w2 + b2, 0.0)
    return jax.nn.softmax(h2 @ w3 + b3, axis=1)


# --------------------------------------------------------------------- main ---
if __name__ == "__main__":
    # small shapes consistent with the module's forward
    B, S = 16, 8                # batch, sequence length
    VOCAB = 100
    H_MODEL = 128               # model_hidden_size (lane-aligned)
    H1, H2, C = 64, 32, 8       # hidden_1_size, hidden_2_size, class_size

    key = jax.random.PRNGKey(0)
    ks = jax.random.split(key, 12)

    # deterministic synthetic parameters (PyTorch layout: W is [in, out])
    tok_emb = jax.random.normal(ks[0], (VOCAB, H_MODEL), jnp.float32) * 0.02
    pos_emb = jax.random.normal(ks[1], (S, H_MODEL), jnp.float32) * 0.02
    ln_g = 1.0 + 0.1 * jax.random.normal(ks[2], (1, H_MODEL), jnp.float32)
    ln_b = 0.05 * jax.random.normal(ks[3], (1, H_MODEL), jnp.float32)

    w1 = jax.random.normal(ks[4], (H_MODEL, H1), jnp.float32) * 0.05
    b1 = jax.random.normal(ks[5], (H1,), jnp.float32) * 0.01
    w2 = jax.random.normal(ks[6], (H1, H2), jnp.float32) * 0.05
    b2 = jax.random.normal(ks[7], (H2,), jnp.float32) * 0.01
    w3 = jax.random.normal(ks[8], (H2, C), jnp.float32) * 0.05
    b3 = jax.random.normal(ks[9], (C,), jnp.float32) * 0.01

    # one-time host-side fold / pad / pack of all parameters
    emb_p, w_stack, b_stack = prepare_params(
        tok_emb, pos_emb, ln_g, ln_b, w1, b1, w2, b2, w3, b3)

    # deterministic example inputs
    input_ids = jax.random.randint(ks[10], (B, S), 0, VOCAB, dtype=jnp.int32)
    attention_mask = jnp.ones((B, S), jnp.int32)

    probs = mymodel_forward(input_ids, attention_mask, emb_p, w_stack, b_stack,
                            num_classes=C)
    probs = jax.block_until_ready(probs)

    # sanity: shape, rows sum to ~1, matches f32 reference (bf16-weight tolerance)
    ref = reference_forward(input_ids, tok_emb, pos_emb, ln_g, ln_b,
                            w1, b1, w2, b2, w3, b3)
    assert probs.shape == (B, C)
    assert jnp.allclose(jnp.sum(probs, axis=1), 1.0, atol=1e-3)
    assert jnp.allclose(probs, ref, atol=2e-2, rtol=2e-2)

    print("KERNEL_OK")
</pallas_src>

<mosaic_0001>
module attributes {stable_mosaic.version = 11 : i64} {
  func.func @head_kernel(%arg0: i32, %arg1: memref<16x8xi32, #tpu.memory_space<vmem>>, %arg2: memref<104x128xf32, #tpu.memory_space<vmem>>, %arg3: memref<3x128x128xbf16, #tpu.memory_space<vmem>>, %arg4: memref<3x128xf32, #tpu.memory_space<vmem>>, %arg5: memref<16x128xf32, #tpu.memory_space<vmem>>) attributes {dimension_semantics = [#tpu.dimension_semantics<parallel>], iteration_bounds = array<i64: 1>, scalar_prefetch = 0 : i64, scratch_operands = 0 : i64, tpu.core_type = #tpu.core_type<tc>, window_params = [{transform_indices = @transform_0, window_bounds = array<i64: 16, 8>}, {pipeline_mode = #tpu.pipeline_mode<synchronous>, transform_indices = @transform_1, window_bounds = array<i64: 104, 128>}, {pipeline_mode = #tpu.pipeline_mode<synchronous>, transform_indices = @transform_2, window_bounds = array<i64: 3, 128, 128>}, {pipeline_mode = #tpu.pipeline_mode<synchronous>, transform_indices = @transform_3, window_bounds = array<i64: 3, 128>}, {transform_indices = @transform_4, window_bounds = array<i64: 16, 128>}]} {
    %c0 = arith.constant 0 : index
    %c0_0 = arith.constant 0 : index
    %0 = vector.load %arg1[%c0, %c0_0] : memref<16x8xi32, #tpu.memory_space<vmem>>, vector<16x8xi32>
    %1 = vector.extract_strided_slice %0 {offsets = [0, 0], sizes = [16, 1], strides = [1, 1]} : vector<16x8xi32> to vector<16x1xi32>
    %2 = tpu.iota {dimensions = array<i32: 1>} : vector<16x104xi32>
    %3 = vector.broadcast %1 : vector<16x1xi32> to vector<16x104xi32>
    %4 = arith.cmpi eq, %2, %3 : vector<16x104xi32>
    %5 = arith.extui %4 : vector<16x104xi1> to vector<16x104xi32>
    %6 = arith.sitofp %5 : vector<16x104xi32> to vector<16x104xf32>
    %c0_1 = arith.constant 0 : index
    %c0_2 = arith.constant 0 : index
    %7 = vector.load %arg2[%c0_1, %c0_2] : memref<104x128xf32, #tpu.memory_space<vmem>>, vector<104x128xf32>
    %cst = arith.constant dense<0.000000e+00> : vector<16x128xf32>
    %8 = tpu.matmul %6, %7, %cst {dimension_numbers = #tpu.dot_dimension_numbers<[1], [0], [0], [1], [0, 0, 1, 1], [], []>} : vector<16x104xf32>, vector<104x128xf32>, vector<16x128xf32> -> vector<16x128xf32>
    %cst_3 = arith.constant dense<0.000000e+00> : vector<16xf32>
    %9 = vector.multi_reduction <add>, %8, %cst_3 [1] : vector<16x128xf32> to vector<16xf32>
    %10 = vector.shape_cast %9 : vector<16xf32> to vector<16x1xf32>
    %cst_4 = arith.constant 1.280000e+02 : f32
    %11 = vector.broadcast %cst_4 : f32 to vector<16x1xf32>
    %12 = arith.divf %10, %11 : vector<16x1xf32>
    %13 = vector.broadcast %12 : vector<16x1xf32> to vector<16x128xf32>
    %14 = arith.subf %8, %13 : vector<16x128xf32>
    %15 = arith.mulf %14, %14 : vector<16x128xf32>
    %cst_5 = arith.constant dense<0.000000e+00> : vector<16xf32>
    %16 = vector.multi_reduction <add>, %15, %cst_5 [1] : vector<16x128xf32> to vector<16xf32>
    %17 = vector.shape_cast %16 : vector<16xf32> to vector<16x1xf32>
    %cst_6 = arith.constant 1.280000e+02 : f32
    %18 = vector.broadcast %cst_6 : f32 to vector<16x1xf32>
    %19 = arith.divf %17, %18 : vector<16x1xf32>
    %cst_7 = arith.constant 9.99999996E-13 : f32
    %20 = vector.broadcast %cst_7 : f32 to vector<16x1xf32>
    %21 = arith.addf %19, %20 : vector<16x1xf32>
    %22 = math.rsqrt %21 : vector<16x1xf32>
    %23 = vector.broadcast %22 : vector<16x1xf32> to vector<16x128xf32>
    %24 = arith.mulf %14, %23 : vector<16x128xf32>
    %c0_8 = arith.constant 0 : index
    %c0_9 = arith.constant 0 : index
    %c0_10 = arith.constant 0 : index
    %25 = vector.load %arg3[%c0_8, %c0_9, %c0_10] : memref<3x128x128xbf16, #tpu.memory_space<vmem>>, vector<3x128x128xbf16>
    %c0_11 = arith.constant 0 : index
    %c0_12 = arith.constant 0 : index
    %26 = vector.load %arg4[%c0_11, %c0_12] : memref<3x128xf32, #tpu.memory_space<vmem>>, vector<3x128xf32>
    %27 = arith.truncf %24 : vector<16x128xf32> to vector<16x128xbf16>
    %28 = vector.extract_strided_slice %25 {offsets = [0, 0, 0], sizes = [1, 128, 128], strides = [1, 1, 1]} : vector<3x128x128xbf16> to vector<1x128x128xbf16>
    %29 = vector.shape_cast %28 : vector<1x128x128xbf16> to vector<128x128xbf16>
    %cst_13 = arith.constant dense<0.000000e+00> : vector<16x128xf32>
    %30 = tpu.matmul %27, %29, %cst_13 {dimension_numbers = #tpu.dot_dimension_numbers<[1], [0], [0], [1], [0, 0, 1, 1], [], []>} : vector<16x128xbf16>, vector<128x128xbf16>, vector<16x128xf32> -> vector<16x128xf32>
    %31 = vector.extract_strided_slice %26 {offsets = [0, 0], sizes = [1, 128], strides = [1, 1]} : vector<3x128xf32> to vector<1x128xf32>
    %32 = vector.shape_cast %31 : vector<1x128xf32> to vector<128xf32>
    %33 = vector.shape_cast %32 : vector<128xf32> to vector<1x128xf32>
    %34 = vector.broadcast %33 : vector<1x128xf32> to vector<16x128xf32>
    %35 = arith.addf %30, %34 : vector<16x128xf32>
    %cst_14 = arith.constant 0.000000e+00 : f32
    %36 = vector.broadcast %cst_14 : f32 to vector<16x128xf32>
    %37 = arith.maximumf %35, %36 : vector<16x128xf32>
    %38 = arith.truncf %37 : vector<16x128xf32> to vector<16x128xbf16>
    %39 = vector.extract_strided_slice %25 {offsets = [1, 0, 0], sizes = [1, 128, 128], strides = [1, 1, 1]} : vector<3x128x128xbf16> to vector<1x128x128xbf16>
    %40 = vector.shape_cast %39 : vector<1x128x128xbf16> to vector<128x128xbf16>
    %cst_15 = arith.constant dense<0.000000e+00> : vector<16x128xf32>
    %41 = tpu.matmul %38, %40, %cst_15 {dimension_numbers = #tpu.dot_dimension_numbers<[1], [0], [0], [1], [0, 0, 1, 1], [], []>} : vector<16x128xbf16>, vector<128x128xbf16>, vector<16x128xf32> -> vector<16x128xf32>
    %42 = vector.extract_strided_slice %26 {offsets = [1, 0], sizes = [1, 128], strides = [1, 1]} : vector<3x128xf32> to vector<1x128xf32>
    %43 = vector.shape_cast %42 : vector<1x128xf32> to vector<128xf32>
    %44 = vector.shape_cast %43 : vector<128xf32> to vector<1x128xf32>
    %45 = vector.broadcast %44 : vector<1x128xf32> to vector<16x128xf32>
    %46 = arith.addf %41, %45 : vector<16x128xf32>
    %cst_16 = arith.constant 0.000000e+00 : f32
    %47 = vector.broadcast %cst_16 : f32 to vector<16x128xf32>
    %48 = arith.maximumf %46, %47 : vector<16x128xf32>
    %49 = arith.truncf %48 : vector<16x128xf32> to vector<16x128xbf16>
    %50 = vector.extract_strided_slice %25 {offsets = [2, 0, 0], sizes = [1, 128, 128], strides = [1, 1, 1]} : vector<3x128x128xbf16> to vector<1x128x128xbf16>
    %51 = vector.shape_cast %50 : vector<1x128x128xbf16> to vector<128x128xbf16>
    %cst_17 = arith.constant dense<0.000000e+00> : vector<16x128xf32>
    %52 = tpu.matmul %49, %51, %cst_17 {dimension_numbers = #tpu.dot_dimension_numbers<[1], [0], [0], [1], [0, 0, 1, 1], [], []>} : vector<16x128xbf16>, vector<128x128xbf16>, vector<16x128xf32> -> vector<16x128xf32>
    %53 = vector.extract_strided_slice %26 {offsets = [2, 0], sizes = [1, 128], strides = [1, 1]} : vector<3x128xf32> to vector<1x128xf32>
    %54 = vector.shape_cast %53 : vector<1x128xf32> to vector<128xf32>
    %55 = vector.shape_cast %54 : vector<128xf32> to vector<1x128xf32>
    %56 = vector.broadcast %55 : vector<1x128xf32> to vector<16x128xf32>
    %57 = arith.addf %52, %56 : vector<16x128xf32>
    %58 = tpu.iota {dimensions = array<i32: 1>} : vector<16x128xi32>
    %c8_i32 = arith.constant 8 : i32
    %59 = vector.broadcast %c8_i32 : i32 to vector<16x128xi32>
    %60 = arith.cmpi slt, %58, %59 : vector<16x128xi32>
    %cst_18 = arith.constant -1.000000e+30 : f32
    %61 = vector.broadcast %cst_18 : f32 to vector<16x128xf32>
    %62 = arith.select %60, %57, %61 : vector<16x128xi1>, vector<16x128xf32>
    %cst_19 = arith.constant dense<0xFF800000> : vector<16xf32>
    %63 = vector.multi_reduction <maximumf>, %62, %cst_19 [1] : vector<16x128xf32> to vector<16xf32>
    %64 = vector.shape_cast %63 : vector<16xf32> to vector<16x1xf32>
    %65 = vector.broadcast %64 : vector<16x1xf32> to vector<16x128xf32>
    %66 = arith.subf %62, %65 : vector<16x128xf32>
    %67 = math.exp %66 : vector<16x128xf32>
    %cst_20 = arith.constant dense<0.000000e+00> : vector<16xf32>
    %68 = vector.multi_reduction <add>, %67, %cst_20 [1] : vector<16x128xf32> to vector<16xf32>
    %69 = vector.shape_cast %68 : vector<16xf32> to vector<16x1xf32>
    %70 = vector.broadcast %69 : vector<16x1xf32> to vector<16x128xf32>
    %71 = arith.divf %67, %70 : vector<16x128xf32>
    %c0_21 = arith.constant 0 : index
    %c0_22 = arith.constant 0 : index
    %72 = vector.load %arg5[%c0_21, %c0_22] : memref<16x128xf32, #tpu.memory_space<vmem>>, vector<16x128xf32>
    tpu.vector_store %arg5[%c0_21, %c0_22], %71 {strides = array<i32>} : memref<16x128xf32, #tpu.memory_space<vmem>>, vector<16x128xf32>,
    return
  }
  func.func @transform_0(%arg0: i32) -> (i32, i32) {
    %c0_i32 = arith.constant 0 : i32
    %c0_i32_0 = arith.constant 0 : i32
    return %arg0, %c0_i32 : i32, i32
  }
  func.func @transform_1(%arg0: i32) -> (i32, i32) {
    %c0_i32 = arith.constant 0 : i32
    %c0_i32_0 = arith.constant 0 : i32
    %c0_i32_1 = arith.constant 0 : i32
    return %c0_i32, %c0_i32_0 : i32, i32
  }
  func.func @transform_2(%arg0: i32) -> (i32, i32, i32) {
    %c0_i32 = arith.constant 0 : i32
    %c0_i32_0 = arith.constant 0 : i32
    %c0_i32_1 = arith.constant 0 : i32
    %c0_i32_2 = arith.constant 0 : i32
    return %c0_i32, %c0_i32_0, %c0_i32_1 : i32, i32, i32
  }
  func.func @transform_3(%arg0: i32) -> (i32, i32) {
    %c0_i32 = arith.constant 0 : i32
    %c0_i32_0 = arith.constant 0 : i32
    %c0_i32_1 = arith.constant 0 : i32
    return %c0_i32, %c0_i32_0 : i32, i32
  }
  func.func @transform_4(%arg0: i32) -> (i32, i32) {
    %c0_i32 = arith.constant 0 : i32
    %c0_i32_0 = arith.constant 0 : i32
    return %arg0, %c0_i32 : i32, i32
  }
}

</mosaic_0001>

<bundles_post_ra>
// kernel: mymodel_forward.1
= control target key start
LH: loop header
LB: loop body
LE: loop exit
PB: predicated region body
PF: predicated region fallthrough
CT: control target
= control target key end

     0   :  { %9 = vsyncpa [#allocation3], 0  ;;  %s887_s0 = inlined_call_operand.vmem [shape: s32[16,8], index: 0, kind: input, shape index: {}]   ;;  %s888_s1 = inlined_call_operand.hbm [shape: f32[104,128], index: 1, kind: input, shape index: {}]   ;;  %s889_s2 = inlined_call_operand.hbm [shape: bf16[3,128,128], index: 2, kind: input, shape index: {}]   ;;  %s890_s3 = inlined_call_operand.vmem [shape: f32[3,128], index: 3, kind: input, shape index: {}]   ;;  %s891_s4 = inlined_call_operand.vmem [shape: f32[16,128], index: 4, kind: output, shape index: {}]  }
   0x1   :  { %10 = vsyncpa [#allocation5], 0  ;;  %s793_s15 = smov [#allocation2]  }
   0x2   :  { %s18_s16 = sshll.u32 %s793_s15, 4  ;;  %s19_s16 = int_to_ptr.vmem [resolvable:$true] %s18_s16 }
   0x3   :  { %s757_s17 = scalar_lea.vmem %s19_s16, 1664  ;;  %p762_p1 = scmp.lt.s32.totalorder %s19_s16, %s19_s16 }
   0x4   :  { %p758_p0 = scmp.ne.s32.totalorder %s19_s16, %s757_s17  ;;  %p763_p2 = scmp.lt.s32.totalorder %s757_s17, %s757_s17 }
   0x6   :  { %p764_p3 = por %p763_p2, %p762_p1 }
   0x8   :  { %p765_p4 = pnand %p764_p3, %p758_p0 }
   0xa   :  { %768 = shalt.err (!%p765_p4)
}
   0xb   :  { %s794_s18 = smov 128   ;;  %s795_s19 = smov 8  }
   0xc   :  { %24 = dma.hbm_to_vmem [thread:$0]  %s888_s1, 1664, %s19_s16, [#allocation3], %s794_s18, %s794_s18, %s795_s19  }
   0xd   :  { %s796_s22 = smov [#allocation4]  }
   0xe   :  { %s30_s23 = sshll.u32 %s796_s22, 4  ;;  %s31_s23 = int_to_ptr.vmem [resolvable:$true] %s30_s23 }
   0xf   :  { %s777_s24 = scalar_lea.vmem %s31_s23, 3072  ;;  %p782_p6 = scmp.lt.s32.totalorder %s31_s23, %s31_s23 }
  0x10   :  { %p778_p5 = scmp.ne.s32.totalorder %s31_s23, %s777_s24  ;;  %p783_p7 = scmp.lt.s32.totalorder %s777_s24, %s777_s24 }
  0x12   :  { %p784_p8 = por %p783_p7, %p782_p6 }
  0x14   :  { %p785_p9 = pnand %p784_p8, %p778_p5 }
  0x16   :  { %788 = shalt.err (!%p785_p9)
}
  0x17   :  { %s797_s25 = smov 64   ;;  %s798_s26 = smov 4  }
  0x18   :  { %36 = dma.hbm_to_vmem [thread:$0]  %s889_s2, 3072, %s31_s23, [#allocation5], %s797_s25, %s797_s25, %s798_s26  }
  0x19   :  { %789 = dma.done.wait [#allocation3], 1664  }
  0x1a   :  { %790 = vsyncadd [#allocation3], 4294965632 }
  0x1b   :  { %791 = dma.done.wait [#allocation5], 3072  }
  0x1c   :  { %792 = vsyncadd [#allocation5], 4294964224  ;;  %v799_v0 = vmov 0   ;;  %v800_v1 = vmov 0.0   ;;  %v46_v2 = vld [vmem:[%s887_s0] sm:$0xff]  ;;  %v73_v4 = vld [vmem:[#allocation2 + $0x58] sm:$0xff]  ;;  %v48_v17 = vlaneseq }
  0x1d   :  { %712 = vset.pattern.permute.xlu0 %v799_v0  ;;  %643 = vmatprep.subr.bf16.mxu1 %v800_v1  ;;  %v74_v3 = vld [vmem:[#allocation2 + $0x60] sm:$0xff]  ;;  %v47_v5 = vld [vmem:[%s887_s0 + $0x8] sm:$0xff]  ;;  %v72_v6 = vld [vmem:[#allocation2 + $0x50] sm:$0xff]  ;;  %vm75_vm0 = vcmask 850944   ;;  %vm801_vm3 = vmmov 0  }
  0x1e   :  { %51 = vperm.xlu0 %712, %v46_v2   ;;  %614 = vmatprep.subr.mxu0 %v74_v3  ;;  %v71_v7 = vld [vmem:[#allocation2 + $0x48] sm:$0xff]  ;;  %v70_v8 = vld [vmem:[#allocation2 + $0x40] sm:$0xff]  ;;  %v69_v9 = vld [vmem:[#allocation2 + $0x38] sm:$0xff]  ;;  %v842_v18 = vand.u32 127, %v48_v17  ;;  %v231_v2 = vshrl.u32 %v48_v17, 7 }
  0x1f   :  { %615 = vmatpush3.msra.mxu0 %v74_v3  ;;  %v68_v10 = vld [vmem:[#allocation2 + $0x30] sm:$0xff]  ;;  %v67_v11 = vld [vmem:[#allocation2 + $0x28] sm:$0xff]  ;;  %v66_v12 = vld [vmem:[#allocation2 + $0x20] sm:$0xff]  ;;  %659 = vmatprep.mubr.msk.bf16.mxu1 %vm801_vm3, %v800_v1 }
  0x20   :  { %616 = vmatprep.subr.mxu0 %v73_v4  ;;  %v65_v13 = vld [vmem:[#allocation2 + $0x18] sm:$0xff]  ;;  %v64_v14 = vld [vmem:[#allocation2 + $0x10] sm:$0xff]  ;;  %v63_v15 = vld [vmem:[#allocation2 + $0x8] sm:$0xff]  ;;  %v232_v3 = vsub.s32 0, %v231_v2  ;;  %vm515_vm4 = vcmp.lt.s32.totalorder %v842_v18, 8 }
  0x21   :  { %617 = vmatpush3.msra.mxu0 %v73_v4  ;;  %v62_v16 = vld [vmem:[#allocation2] sm:$0xff]  ;;  %v714_v26 = vld [vmem:[#allocation4 + $0x30] sm:$0xff]   ;;  %v715_v35 = vld [vmem:[#allocation4 + $0x28] sm:$0xff]  }
  0x22   :  { %54 = vperm.xlu0 %712, %v47_v5   ;;  %618 = vmatprep.subr.mxu0 %v72_v6  ;;  %v713_v25 = vld [vmem:[#allocation4 + $0x38] sm:$0xff]   ;;  %v716_v36 = vld [vmem:[#allocation4 + $0x20] sm:$0xff]   ;;  %v718_v38 = vld [vmem:[#allocation4 + $0x10] sm:$0xff]  }
  0x23   :  { %619 = vmatpush3.msra.mxu0 %v72_v6  ;;  %644 = vmatpush3.bf16.msra.mxu1 %v713_v25  ;;  %v717_v37 = vld [vmem:[#allocation4 + $0x18] sm:$0xff]   ;;  %v719_v39 = vld [vmem:[#allocation4 + $0x8] sm:$0xff]   ;;  %v720_v40 = vld [vmem:[#allocation4] sm:$0xff]  }
  0x24   :  { %620 = vmatprep.subr.mxu0 %v71_v7  ;;  %645 = vmatprep.subr.bf16.mxu1 %v800_v1  ;;  %v721_v41 = vld [vmem:[#allocation4 + $0x78] sm:$0xff]   ;;  %v722_v42 = vld [vmem:[#allocation4 + $0x70] sm:$0xff]   ;;  %v723_v43 = vld [vmem:[#allocation4 + $0x68] sm:$0xff]  }
  0x25   :  { %621 = vmatpush3.msra.mxu0 %v71_v7  ;;  %v724_v44 = vld [vmem:[#allocation4 + $0x60] sm:$0xff]   ;;  %v725_v45 = vld [vmem:[#allocation4 + $0x58] sm:$0xff]   ;;  %v726_v57 = vld [vmem:[#allocation4 + $0x50] sm:$0xff]  }
  0x26   :  { %622 = vmatprep.subr.mxu0 %v70_v8  ;;  %v727_v58 = vld [vmem:[#allocation4 + $0x48] sm:$0xff]   ;;  %v728_v59 = vld [vmem:[#allocation4 + $0x40] sm:$0xff]   ;;  %v729_v60 = vld [vmem:[#allocation4 + $0xb8] sm:$0xff]  }
  0x27   :  { %623 = vmatpush3.msra.mxu0 %v70_v8  ;;  %646 = vmatpush3.bf16.msra.mxu1 %v714_v26  ;;  %v730_v61 = vld [vmem:[#allocation4 + $0xb0] sm:$0xff]   ;;  %v731_v62 = vld [vmem:[#allocation4 + $0xa8] sm:$0xff]   ;;  %v732_v63 = vld [vmem:[#allocation4 + $0xa0] sm:$0xff]  }
  0x28   :  { %624 = vmatprep.subr.mxu0 %v69_v9  ;;  %647 = vmatprep.subr.bf16.mxu1 %v800_v1  ;;  %v733_v0 = vld [vmem:[#allocation4 + $0x98] sm:$0xff]   ;;  %v736_v17 = vld [vmem:[#allocation4 + $0x80] sm:$0xff]  }
  0x29   :  { %625 = vmatpush3.msra.mxu0 %v69_v9  ;;  %v228_v4 = vld [vmem:[%s890_s3] sm:$0x7] }
  0x2a   :  { %626 = vmatprep.subr.mxu0 %v68_v10  ;;  %v233_v5 = vrot.slane %v228_v4, %v232_v3 }
  0x2b   :  { %627 = vmatpush3.msra.mxu0 %v68_v10  ;;  %648 = vmatpush3.bf16.msra.mxu1 %v715_v35 }
  0x2c   :  { %628 = vmatprep.subr.mxu0 %v67_v11  ;;  %649 = vmatprep.subr.bf16.mxu1 %v800_v1 }
  0x2d   :  { %629 = vmatpush3.msra.mxu0 %v67_v11 }
  0x2e   :  { %630 = vmatprep.subr.mxu0 %v66_v12 }
  0x2f   :  { %631 = vmatpush3.msra.mxu0 %v66_v12  ;;  %650 = vmatpush3.bf16.msra.mxu1 %v716_v36 }
  0x30   :  { %632 = vmatprep.subr.mxu0 %v65_v13  ;;  %651 = vmatprep.subr.bf16.mxu1 %v800_v1 }
  0x31   :  { %633 = vmatpush3.msra.mxu0 %v65_v13 }
  0x32   :  { %634 = vmatprep.subr.mxu0 %v64_v14 }
  0x33   :  { %635 = vmatpush3.msra.mxu0 %v64_v14  ;;  %652 = vmatpush3.bf16.msra.mxu1 %v717_v37 }
  0x34   :  { %636 = vmatprep.subr.mxu0 %v63_v15  ;;  %653 = vmatprep.subr.bf16.mxu1 %v800_v1 }
  0x35   :  { %637 = vmatpush3.msra.mxu0 %v63_v15  ;;  %v734_v15 = vld [vmem:[#allocation4 + $0x90] sm:$0xff]  }
  0x36   :  { %638 = vmatprep.subr.mxu0 %v62_v16 }
  0x37   :  { %639 = vmatpush3.msra.mxu0 %v62_v16  ;;  %654 = vmatpush3.bf16.msra.mxu1 %v718_v38  ;;  %v735_v16 = vld [vmem:[#allocation4 + $0x88] sm:$0xff]  }
  0x38   :  { %663 = vmatprep.subr.bf16.mxu0 %v800_v1  ;;  %655 = vmatprep.subr.bf16.mxu1 %v800_v1 }
  0x3b   :  { %656 = vmatpush3.bf16.msra.mxu1 %v719_v39 }
  0x3c   :  { %657 = vmatprep.subr.bf16.mxu1 %v800_v1 }
  0x3f   :  { %658 = vmatpush3.bf16.msra.mxu1 %v720_v40 }
  0x40   :  { %683 = vmatprep.subr.bf16.mxu1 %v800_v1 }
  0x99   :  { %v52_v19 = vpop.permute.xlu0 %51 }
  0x9a   :  { %vm56_vm1 = vcmp.eq.s32.totalorder %v842_v18, %v52_v19  ;;  %v328_v19 = vsub.s32 1, %v231_v2 }
  0x9b   :  { %v544_v20 = vsel %vm56_vm1, 1.0, %v800_v1 }
  0x9c   :  { %640 = vmatprep.mubr.msk.f32.mxu0 %vm75_vm0, %v544_v20  ;;  %v329_v20 = vrot.slane %v228_v4, %v328_v19 }
  0x9d   :  { %v55_v21 = vpop.permute.xlu0 %54 }
  0x9e   :  { %vm57_vm2 = vcmp.eq.s32.totalorder %v842_v18, %v55_v21 }
  0x9f   :  { %v545_v22 = vsel %vm57_vm2, 1.0, %v800_v1 }
  0xa0   :  { %641 = vmatmul.mubr.msk.f32.vlgmr.msra.gmra.mxu0 %vm75_vm0, %v545_v22 }
  0xa1   :  { %679 = vmatprep.mubr.msk.bf16.mxu0 %vm801_vm3, %v800_v1  ;;  %664 = vmatpush3.bf16.msra.mxu0 %v721_v41 }
  0xa2   :  { %665 = vmatprep.subr.bf16.mxu0 %v800_v1 }
  0xa5   :  { %666 = vmatpush3.bf16.msra.mxu0 %v722_v42 }
  0xa6   :  { %667 = vmatprep.subr.bf16.mxu0 %v800_v1 }
  0xa9   :  { %668 = vmatpush3.bf16.msra.mxu0 %v723_v43 }
  0xaa   :  { %669 = vmatprep.subr.bf16.mxu0 %v800_v1 }
  0xad   :  { %670 = vmatpush3.bf16.msra.mxu0 %v724_v44 }
  0xae   :  { %671 = vmatprep.subr.bf16.mxu0 %v800_v1 }
  0xb1   :  { %672 = vmatpush3.bf16.msra.mxu0 %v725_v45 }
  0xb2   :  { %673 = vmatprep.subr.bf16.mxu0 %v800_v1 }
  0xb5   :  { %674 = vmatpush3.bf16.msra.mxu0 %v726_v57 }
  0xb6   :  { %675 = vmatprep.subr.bf16.mxu0 %v800_v1 }
  0xb9   :  { %676 = vmatpush3.bf16.msra.mxu0 %v727_v58 }
  0xba   :  { %677 = vmatprep.subr.bf16.mxu0 %v800_v1 }
  0xbd   :  { %678 = vmatpush3.bf16.msra.mxu0 %v728_v59 }
 0x160   :  { %v642_v23 = vpop.f32.mrf.mxu0 }
 0x162   :  { %v148_v24 = vpop.f32.mrf.mxu0 }
 0x163   :  { %157 = vadd.xlane.f32.xlu1 %v148_v24 }
 0x167   :  { %159 = vadd.xlane.f32.xlu1 %v642_v23 }
 0x1ec   :  { %v158_v27 = vpop.xlane.xlu1 %157 }
 0x1ed   :  { %v162_v28 = vmul.f32 0.0078125, %v158_v27 }
 0x1ef   :  { %v164_v29 = vsub.f32 %v148_v24, %v162_v28 }
 0x1f0   :  { %v160_v30 = vpop.xlane.xlu1 %159 }
 0x1f1   :  { %v163_v31 = vmul.f32 0.0078125, %v160_v30  ;;  %v166_v32 = vmul.f32 %v164_v29, %v164_v29  ;;  %v424_v30 = vsub.s32 2, %v231_v2 }
 0x1f3   :  { %v165_v33 = vsub.f32 %v642_v23, %v163_v31  ;;  %168 = vadd.xlane.f32.xlu0 %v166_v32  ;;  %v425_v31 = vrot.slane %v228_v4, %v424_v30 }
 0x1f5   :  { %v167_v34 = vmul.f32 %v165_v33, %v165_v33 }
 0x1f7   :  { %170 = vadd.xlane.f32.xlu1 %v167_v34 }
 0x27c   :  { %v169_v46 = vpop.xlane.xlu0 %168 }
 0x27d   :  { %v172_v47 = vmul.f32 0.0078125, %v169_v46 }
 0x27f   :  { %v174_v48 = vadd.f32 1e-12, %v172_v47 }
 0x280   :  { %v171_v49 = vpop.xlane.xlu1 %170 }
 0x281   :  { %v173_v50 = vmul.f32 0.0078125, %v171_v49  ;;  %737 = vrsqrt.f32 %v174_v48 }
 0x283   :  { %v175_v51 = vadd.f32 1e-12, %v173_v50 }
 0x285   :  { %739 = vrsqrt.f32 %v175_v51 }
 0x28e   :  { %v738_v52 = vpop.eup %737 }
 0x28f   :  { %v178_v54 = vmul.f32 %v738_v52, %v164_v29 }
 0x292   :  { %v740_v53 = vpop.eup %739 }
 0x293   :  { %v179_v55 = vmul.f32 %v740_v53, %v165_v33 }
 0x295   :  { %v229_v56 = vpack.c.bf16 %v179_v55, %v178_v54 }
 0x297   :  { %660 = vmatmul.mubr.bf16.vlgmr.msra.gmra.mxu1 %v229_v56 }
 0x298   :  { %699 = vmatprep.mubr.msk.bf16.mxu1 %vm801_vm3, %v800_v1  ;;  %684 = vmatpush3.bf16.msra.mxu1 %v729_v60 }
 0x299   :  { %685 = vmatprep.subr.bf16.mxu1 %v800_v1 }
 0x29c   :  { %686 = vmatpush3.bf16.msra.mxu1 %v730_v61 }
 0x29d   :  { %687 = vmatprep.subr.bf16.mxu1 %v800_v1 }
 0x2a0   :  { %688 = vmatpush3.bf16.msra.mxu1 %v731_v62 }
 0x2a1   :  { %689 = vmatprep.subr.bf16.mxu1 %v800_v1 }
 0x2a4   :  { %690 = vmatpush3.bf16.msra.mxu1 %v732_v63 }
 0x2a5   :  { %691 = vmatprep.subr.bf16.mxu1 %v800_v1 }
 0x2a8   :  { %692 = vmatpush3.bf16.msra.mxu1 %v733_v0 }
 0x2a9   :  { %693 = vmatprep.subr.bf16.mxu1 %v800_v1 }
 0x2ac   :  { %694 = vmatpush3.bf16.msra.mxu1 %v734_v15 }
 0x2ad   :  { %695 = vmatprep.subr.bf16.mxu1 %v800_v1 }
 0x2b0   :  { %696 = vmatpush3.bf16.msra.mxu1 %v735_v16 }
 0x2b1   :  { %697 = vmatprep.subr.bf16.mxu1 %v800_v1 }
 0x2b4   :  { %698 = vmatpush3.bf16.msra.mxu1 %v736_v17 }
 0x357   :  { %v316_v6 = vpop.f32.mrf.mxu1 }
 0x358   :  { %v317_v8 = vadd.f32 %v316_v6, %v233_v5 }
 0x359   :  { %v661_v7 = vpop.f32.mrf.mxu1 }
 0x35a   :  { %v323_v12 = vmax.f32 %v317_v8, 0.0 }
 0x35b   :  { %v319_v9 = vpop.f32.mrf.mxu1 }
 0x35c   :  { %v320_v10 = vadd.f32 %v319_v9, %v233_v5 }
 0x35d   :  { %v662_v11 = vpop.f32.mrf.mxu1 }
 0x35e   :  { %v324_v13 = vmax.f32 %v320_v10, 0.0 }
 0x360   :  { %v325_v14 = vpack.c.bf16 %v324_v13, %v323_v12 }
 0x362   :  { %680 = vmatmul.mubr.bf16.vlgmr.msra.gmra.mxu0 %v325_v14 }
 0x422   :  { %v412_v21 = vpop.f32.mrf.mxu0 }
 0x423   :  { %v413_v23 = vadd.f32 %v412_v21, %v329_v20 }
 0x424   :  { %v681_v22 = vpop.f32.mrf.mxu0 }
 0x425   :  { %v419_v27 = vmax.f32 %v413_v23, 0.0 }
 0x426   :  { %v415_v24 = vpop.f32.mrf.mxu0 }
 0x427   :  { %v416_v25 = vadd.f32 %v415_v24, %v329_v20 }
 0x428   :  { %v682_v26 = vpop.f32.mrf.mxu0 }
 0x429   :  { %v420_v28 = vmax.f32 %v416_v25, 0.0 }
 0x42b   :  { %v421_v29 = vpack.c.bf16 %v420_v28, %v419_v27 }
 0x42d   :  { %700 = vmatmul.mubr.bf16.vlgmr.msra.gmra.mxu1 %v421_v29 }
 0x4ed   :  { %v508_v32 = vpop.f32.mrf.mxu1 }
 0x4ee   :  { %v509_v1 = vadd.f32 %v508_v32, %v425_v31 }
 0x4ef   :  { %v701_v33 = vpop.f32.mrf.mxu1 }
 0x4f0   :  { %v516_v34 = vsel %vm515_vm4, %v509_v1, -1e+30 }
 0x4f1   :  { %518 = vmax.xlane.f32.xlu1 %v516_v34  ;;  %v511_v35 = vpop.f32.mrf.mxu1 }
 0x4f2   :  { %v512_v36 = vadd.f32 %v511_v35, %v425_v31 }
 0x4f3   :  { %v702_v37 = vpop.f32.mrf.mxu1 }
 0x4f4   :  { %v517_v38 = vsel %vm515_vm4, %v512_v36, -1e+30 }
 0x4f5   :  { %520 = vmax.xlane.f32.xlu1 %v517_v38 }
 0x57a   :  { %v519_v39 = vpop.xlane.xlu1 %518 }
 0x57b   :  { %v522_v40 = vsub.f32 %v516_v34, %v519_v39 }
 0x57d   :  { %v524_v41 = vmul.f32 1.442695, %v522_v40 }
 0x57e   :  { %v521_v42 = vpop.xlane.xlu1 %520 }
 0x57f   :  { %741 = vpow2.f32 %v524_v41  ;;  %v523_v43 = vsub.f32 %v517_v38, %v521_v42 }
 0x581   :  { %v526_v44 = vmul.f32 1.442695, %v523_v43 }
 0x583   :  { %743 = vpow2.f32 %v526_v44 }
 0x58c   :  { %v742_v45 = vpop.eup %741 }
 0x58d   :  { %528 = vadd.xlane.f32.xlu1 %v742_v45 }
 0x590   :  { %v744_v18 = vpop.eup %743 }
 0x591   :  { %530 = vadd.xlane.f32.xlu1 %v744_v18 }
 0x616   :  { %v529_v46 = vpop.xlane.xlu1 %528 }
 0x617   :  { %745 = vrcp.f32 %v529_v46 }
 0x61a   :  { %v531_v47 = vpop.xlane.xlu1 %530 }
 0x61b   :  { %747 = vrcp.f32 %v531_v47 }
 0x624   :  { %v746_v48 = vpop.eup %745 }
 0x625   :  { %v533_v49 = vmul.f32 %v746_v48, %v742_v45 }
 0x627   :  { %536 = vst [vmem:[%s891_s4] sm:$0xff] %v533_v49 }
 0x628   :  { %v748_v50 = vpop.eup %747 }
 0x629   :  { %v535_v51 = vmul.f32 %v748_v50, %v744_v18 }
 0x62b   :  { %537 = vst [vmem:[%s891_s4 + $0x8] sm:$0xff] %v535_v51 }
 0x62c   :  { %542 = vsyncpa [#allocation3], 1 }
 0x62d   :  { %543 = vsyncpa [#allocation5], 1 }

</bundles_post_ra>
